<compile_context>
chip_gen: v7x
topology: tpu7x:2x2x1
jax: 0.10.0
libtpu: 0.0.40
codegen_flags: <defaults>
</compile_context>

<pallas_src>
import jax
import jax.numpy as jnp
from jax.experimental import pallas as pl
from jax.experimental.pallas import tpu as pltpu

LANE = 128
VMEM_LIMIT_BYTES = 32 * 1024 * 1024   # safe scoped limit on v5e / v6e / v7x
VMEM_BUDGET_BYTES = 24 * 1024 * 1024  # double-buffered tile budget (headroom)


# ------------------------------ small helpers -------------------------------

def _round_up(x, m):
    return ((x + m - 1) // m) * m


def _pad2d(a, rows, cols):
    r, c = a.shape
    if r == rows and c == cols:
        return a
    return jnp.pad(a, ((0, rows - r), (0, cols - c)))


def _agg_vmem_bytes(tm, tk, d_pad):
    """Double-buffered VMEM footprint of the tiled aggregation kernel."""
    adj = 2 * tm * tk * 2        # bf16 adjacency tile, double buffered
    sup = 2 * tk * d_pad * 2     # bf16 support tile, double buffered
    out = 2 * tm * d_pad * 2     # bf16 output tile, double buffered
    acc = tm * d_pad * 4         # f32 accumulator scratch
    return adj + sup + out + acc


def _fused_vmem_bytes(n_pad, din_pad, d_pad):
    """Rough VMEM footprint of the single-block fused layer kernel."""
    return (n_pad * n_pad * 2 + n_pad * din_pad * 2 + din_pad * d_pad * 2
            + n_pad * d_pad * 2          # bf16 operands + output
            + 2 * n_pad * d_pad * 4)     # f32 support / agg temporaries


def _choose_tiles(n, d_pad):
    """Pick (tm, tk, n_pad).

    Tiles are power-of-two multiples of 128 chosen for size first; N is then
    padded up to a multiple of tk (tm divides tk).  A tile is only shrunk if
    the padding waste would exceed 25% or the VMEM budget is exceeded.
    """
    n128 = _round_up(max(n, 1), LANE)

    def pick(pref):
        t = pref
        while t > LANE and _round_up(n128, t) > n128 + n128 // 4:
            t //= 2
        return max(t, LANE)

    tk = pick(2048)          # reduction (adjacency-column) tile
    tm = min(1024, tk)       # row tile (parallel axis); divides tk
    while tk > LANE and _agg_vmem_bytes(tm, tk, d_pad) > VMEM_BUDGET_BYTES:
        tk //= 2
    tm = min(tm, tk)
    while tm > LANE and _agg_vmem_bytes(tm, tk, d_pad) > VMEM_BUDGET_BYTES:
        tm //= 2
    n_pad = _round_up(n128, tk)
    return tm, tk, n_pad


# ----------------------------- Pallas kernels --------------------------------

def _support_kernel(x_ref, w_ref, out_ref):
    """support = X @ W.  bf16 inputs, f32 accumulation, bf16 store."""
    out_ref[...] = jnp.dot(
        x_ref[...], w_ref[...], preferred_element_type=jnp.float32
    ).astype(out_ref.dtype)


def support_matmul(x_bf16, w_bf16, *, tm):
    n_pad, din_pad = x_bf16.shape
    d_pad = w_bf16.shape[1]
    steps = n_pad // tm
    flops = 2 * n_pad * din_pad * d_pad
    bytes_accessed = (n_pad * din_pad * 2            # X read once
                      + steps * din_pad * d_pad * 2  # W re-read per row tile
                      + n_pad * d_pad * 2)           # bf16 output write
    return pl.pallas_call(
        _support_kernel,
        out_shape=jax.ShapeDtypeStruct((n_pad, d_pad), jnp.bfloat16),
        grid_spec=pltpu.PrefetchScalarGridSpec(
            num_scalar_prefetch=0,
            grid=(steps,),
            in_specs=[
                pl.BlockSpec((tm, din_pad), lambda i: (i, 0)),
                pl.BlockSpec((din_pad, d_pad), lambda i: (0, 0)),
            ],
            out_specs=pl.BlockSpec((tm, d_pad), lambda i: (i, 0)),
        ),
        compiler_params=pltpu.CompilerParams(
            dimension_semantics=("parallel",),
            vmem_limit_bytes=VMEM_LIMIT_BYTES),
        cost_estimate=pl.CostEstimate(flops=flops, transcendentals=0,
                                      bytes_accessed=bytes_accessed),
    )(x_bf16, w_bf16)


def _gcn_agg_kernel(adj_ref, sup_ref, out_ref, acc_ref):
    """out = relu((A_hat + I) @ support), tiled over (row tiles, k tiles)."""
    k = pl.program_id(1)

    @pl.when(k == 0)
    def _init():
        acc_ref[...] = jnp.zeros_like(acc_ref)

    acc_ref[...] += jnp.dot(adj_ref[...], sup_ref[...],
                            preferred_element_type=jnp.float32)

    @pl.when(k == pl.num_programs(1) - 1)
    def _epilogue():
        out_ref[...] = jnp.maximum(acc_ref[...], 0.0).astype(out_ref.dtype)


def gcn_aggregate(adj_bf16, support_bf16, *, tm, tk):
    n_pad = adj_bf16.shape[0]
    d_pad = support_bf16.shape[1]
    row_steps = n_pad // tm
    flops = 2 * n_pad * n_pad * d_pad
    bytes_accessed = (n_pad * n_pad * 2                    # adjacency, read once
                      + row_steps * n_pad * d_pad * 2      # support re-read / row tile
                      + n_pad * d_pad * 2)                 # bf16 output write
    # NOTE: pipeline_mode=pl.Buffered(3) on the adjacency spec is a further
    # latency-hiding knob if a profile shows exposed DMA waits.
    return pl.pallas_call(
        _gcn_agg_kernel,
        out_shape=jax.ShapeDtypeStruct((n_pad, d_pad), jnp.bfloat16),
        grid_spec=pltpu.PrefetchScalarGridSpec(
            num_scalar_prefetch=0,
            grid=(row_steps, n_pad // tk),        # reduction axis last
            in_specs=[
                pl.BlockSpec((tm, tk), lambda i, k: (i, k)),     # adjacency tile
                pl.BlockSpec((tk, d_pad), lambda i, k: (k, 0)),  # support (contracted)
            ],
            out_specs=pl.BlockSpec((tm, d_pad), lambda i, k: (i, 0)),
            scratch_shapes=[pltpu.VMEM((tm, d_pad), jnp.float32)],
        ),
        compiler_params=pltpu.CompilerParams(
            dimension_semantics=("parallel", "arbitrary"),
            vmem_limit_bytes=VMEM_LIMIT_BYTES),
        cost_estimate=pl.CostEstimate(flops=flops, transcendentals=0,
                                      bytes_accessed=bytes_accessed),
    )(adj_bf16, support_bf16)


def _fused_layer_kernel(adj_ref, x_ref, w_ref, out_ref):
    """Single-block fused layer: out = relu((A_hat + I) @ (X @ W))."""
    support = jnp.dot(x_ref[...], w_ref[...],
                      preferred_element_type=jnp.float32)
    agg = jnp.dot(adj_ref[...], support.astype(jnp.bfloat16),
                  preferred_element_type=jnp.float32)
    out_ref[...] = jnp.maximum(agg, 0.0).astype(out_ref.dtype)


def fused_gcn_layer(adj_bf16, x_bf16, w_bf16):
    n_pad = adj_bf16.shape[0]
    din_pad = x_bf16.shape[1]
    d_pad = w_bf16.shape[1]
    flops = 2 * n_pad * din_pad * d_pad + 2 * n_pad * n_pad * d_pad
    bytes_accessed = (n_pad * n_pad * 2 + n_pad * din_pad * 2
                      + din_pad * d_pad * 2 + n_pad * d_pad * 2)
    return pl.pallas_call(
        _fused_layer_kernel,
        out_shape=jax.ShapeDtypeStruct((n_pad, d_pad), jnp.bfloat16),
        grid_spec=pltpu.PrefetchScalarGridSpec(
            num_scalar_prefetch=0,
            grid=(1,),
            in_specs=[
                pl.BlockSpec((n_pad, n_pad), lambda i: (0, 0)),
                pl.BlockSpec((n_pad, din_pad), lambda i: (0, 0)),
                pl.BlockSpec((din_pad, d_pad), lambda i: (0, 0)),
            ],
            out_specs=pl.BlockSpec((n_pad, d_pad), lambda i: (0, 0)),
        ),
        compiler_params=pltpu.CompilerParams(
            dimension_semantics=("arbitrary",),
            vmem_limit_bytes=VMEM_LIMIT_BYTES),
        cost_estimate=pl.CostEstimate(flops=flops, transcendentals=0,
                                      bytes_accessed=bytes_accessed),
    )(adj_bf16, x_bf16, w_bf16)


# ------------------------------- JAX glue ------------------------------------

def normalized_adj_plus_identity(edges, num_nodes):
    """Dense D^-1/2 (A + A^T + I) D^-1/2  +  I  (residual folded in)."""
    heads = edges[:, 0]
    tails = edges[:, 1]
    a = jnp.zeros((num_nodes, num_nodes), dtype=jnp.float32)
    a = a.at[heads, tails].set(1.0)
    a = a.at[tails, heads].set(1.0)
    eye = jnp.eye(num_nodes, dtype=jnp.float32)
    a = jnp.maximum(a, eye)                      # self loops
    deg = jnp.sum(a, axis=1)
    d_inv_sqrt = jnp.where(deg > 0, jax.lax.rsqrt(deg), 0.0)
    a_hat = a * d_inv_sqrt[:, None] * d_inv_sqrt[None, :]
    return a_hat + eye                           # (A_hat + I) S == A_hat S + S


def xavier_uniform(key, shape):
    fan_in, fan_out = shape
    limit = jnp.sqrt(6.0 / (fan_in + fan_out))
    return jax.random.uniform(key, shape, jnp.float32, -limit, limit)


def _gcn_forward(adj_p, h0_p, weights, *, tm, tk):
    """Run the stacked GCN layers on one (pre-padded, bf16) graph."""
    n_pad = adj_p.shape[0]
    h = h0_p
    for w in weights:
        din_pad, d_pad = w.shape
        single_block = (tm == n_pad) and (tk == n_pad)
        if single_block and _fused_vmem_bytes(n_pad, din_pad, d_pad) <= VMEM_BUDGET_BYTES:
            h = fused_gcn_layer(adj_p, h, w)
        else:
            support = support_matmul(h, w, tm=tm)
            h = gcn_aggregate(adj_p, support, tm=tm, tk=tk)
    return h


_gcn_forward_jit = jax.jit(_gcn_forward, static_argnames=("tm", "tk"))


class NameGCNPallas:
    """JAX/Pallas mirror of NameGCN (eval mode: dropout is identity)."""

    def __init__(self, dim, layer_num, drop_out,
                 sr_ent_embed, tg_ent_embed, edges_sr, edges_tg, key):
        del drop_out  # TODO(synk): dropout is training-only; eval forward = identity.
        self.out_dim = dim
        self.d_pad = _round_up(dim, LANE)

        in_dim = sr_ent_embed.shape[1]
        dims = [in_dim] + [dim] * layer_num
        keys = jax.random.split(key, layer_num)
        # Weights stored zero-padded to lane multiples, bf16 (MXU operand).
        weights = []
        for i in range(layer_num):
            w = xavier_uniform(keys[i], (dims[i], dims[i + 1]))
            w_p = _pad2d(w, _round_up(dims[i], LANE), _round_up(dims[i + 1], LANE))
            weights.append(w_p.astype(jnp.bfloat16))
        self.weights = tuple(weights)

        # Adjacency normalization, padding and bf16 casts are done once here
        # (edges / embeddings are frozen parameters in the reference module).
        self.adj_sr, self.h0_sr, self.tiles_sr, self.n_sr = \
            self._prep_graph(edges_sr, sr_ent_embed)
        self.adj_tg, self.h0_tg, self.tiles_tg, self.n_tg = \
            self._prep_graph(edges_tg, tg_ent_embed)

    def _prep_graph(self, edges, embed):
        n, in_dim = embed.shape
        tm, tk, n_pad = _choose_tiles(n, self.d_pad)
        adj = normalized_adj_plus_identity(edges, n)
        adj_p = _pad2d(adj, n_pad, n_pad).astype(jnp.bfloat16)
        h0_p = _pad2d(embed, n_pad, _round_up(in_dim, LANE)).astype(jnp.bfloat16)
        return adj_p, h0_p, (tm, tk), n

    def forward(self, sr_ent_seeds, tg_ent_seeds, triples_sr=None, triples_tg=None):
        tm_sr, tk_sr = self.tiles_sr
        tm_tg, tk_tg = self.tiles_tg
        sr_hid_p = _gcn_forward_jit(self.adj_sr, self.h0_sr, self.weights,
                                    tm=tm_sr, tk=tk_sr)
        tg_hid_p = _gcn_forward_jit(self.adj_tg, self.h0_tg, self.weights,
                                    tm=tm_tg, tk=tk_tg)
        sr_ent_hid = sr_hid_p[:self.n_sr, :self.out_dim].astype(jnp.float32)
        tg_ent_hid = tg_hid_p[:self.n_tg, :self.out_dim].astype(jnp.float32)
        sr_seed_hid = jnp.take(sr_ent_hid, sr_ent_seeds, axis=0)
        tg_seed_hid = jnp.take(tg_ent_hid, tg_ent_seeds, axis=0)
        return sr_seed_hid, tg_seed_hid, sr_ent_hid, tg_ent_hid


# --------------------------------- main ---------------------------------------

if __name__ == "__main__":
    key = jax.random.PRNGKey(0)
    k_emb_sr, k_emb_tg, k_edge_sr, k_edge_tg, k_seed_sr, k_seed_tg, k_w = \
        jax.random.split(key, 7)

    N_SR, N_TG = 64, 64        # entities per KG
    IN_DIM = 32                # input (name) embedding dim
    DIM = 32                   # GCN hidden/output dim
    LAYER_NUM = 2
    N_EDGES = 128
    N_SEEDS = 8

    sr_ent_embed = jax.random.normal(k_emb_sr, (N_SR, IN_DIM), jnp.float32)
    tg_ent_embed = jax.random.normal(k_emb_tg, (N_TG, IN_DIM), jnp.float32)
    edges_sr = jax.random.randint(k_edge_sr, (N_EDGES, 2), 0, N_SR, jnp.int32)
    edges_tg = jax.random.randint(k_edge_tg, (N_EDGES, 2), 0, N_TG, jnp.int32)
    sr_ent_seeds = jax.random.randint(k_seed_sr, (N_SEEDS,), 0, N_SR, jnp.int32)
    tg_ent_seeds = jax.random.randint(k_seed_tg, (N_SEEDS,), 0, N_TG, jnp.int32)

    model = NameGCNPallas(DIM, LAYER_NUM, 0.5,
                          sr_ent_embed, tg_ent_embed, edges_sr, edges_tg, k_w)

    sr_seed_hid, tg_seed_hid, sr_ent_hid, tg_ent_hid = model.forward(
        sr_ent_seeds, tg_ent_seeds, None, None)

    jax.block_until_ready((sr_seed_hid, tg_seed_hid, sr_ent_hid, tg_ent_hid))

    assert sr_seed_hid.shape == (N_SEEDS, DIM)
    assert tg_seed_hid.shape == (N_SEEDS, DIM)
    assert sr_ent_hid.shape == (N_SR, DIM)
    assert tg_ent_hid.shape == (N_TG, DIM)
    assert jnp.all(jnp.isfinite(sr_seed_hid)) and jnp.all(jnp.isfinite(tg_seed_hid))
    assert jnp.all(sr_ent_hid >= 0.0) and jnp.all(tg_ent_hid >= 0.0)  # ReLU output

    print("KERNEL_OK")
</pallas_src>

<mosaic_0001>
module attributes {stable_mosaic.version = 11 : i64} {
  func.func @_fused_layer_kernel(%arg0: i32, %arg1: memref<128x128xbf16, #tpu.memory_space<vmem>>, %arg2: memref<128x128xbf16, #tpu.memory_space<vmem>>, %arg3: memref<128x128xbf16, #tpu.memory_space<vmem>>, %arg4: memref<128x128xbf16, #tpu.memory_space<vmem>>) attributes {dimension_semantics = [#tpu.dimension_semantics<arbitrary>], iteration_bounds = array<i64: 1>, scalar_prefetch = 0 : i64, scratch_operands = 0 : i64, tpu.core_type = #tpu.core_type<tc>, window_params = [{pipeline_mode = #tpu.pipeline_mode<synchronous>, transform_indices = @transform_0, window_bounds = array<i64: 128, 128>}, {pipeline_mode = #tpu.pipeline_mode<synchronous>, transform_indices = @transform_1, window_bounds = array<i64: 128, 128>}, {pipeline_mode = #tpu.pipeline_mode<synchronous>, transform_indices = @transform_2, window_bounds = array<i64: 128, 128>}, {pipeline_mode = #tpu.pipeline_mode<synchronous>, transform_indices = @transform_3, window_bounds = array<i64: 128, 128>}]} {
    %c0 = arith.constant 0 : index
    %c0_0 = arith.constant 0 : index
    %0 = vector.load %arg2[%c0, %c0_0] : memref<128x128xbf16, #tpu.memory_space<vmem>>, vector<128x128xbf16>
    %c0_1 = arith.constant 0 : index
    %c0_2 = arith.constant 0 : index
    %1 = vector.load %arg3[%c0_1, %c0_2] : memref<128x128xbf16, #tpu.memory_space<vmem>>, vector<128x128xbf16>
    %cst = arith.constant dense<0.000000e+00> : vector<128x128xf32>
    %2 = tpu.matmul %0, %1, %cst {dimension_numbers = #tpu.dot_dimension_numbers<[1], [0], [0], [1], [0, 0, 1, 1], [], []>} : vector<128x128xbf16>, vector<128x128xbf16>, vector<128x128xf32> -> vector<128x128xf32>
    %c0_3 = arith.constant 0 : index
    %c0_4 = arith.constant 0 : index
    %3 = vector.load %arg1[%c0_3, %c0_4] : memref<128x128xbf16, #tpu.memory_space<vmem>>, vector<128x128xbf16>
    %4 = arith.truncf %2 : vector<128x128xf32> to vector<128x128xbf16>
    %cst_5 = arith.constant dense<0.000000e+00> : vector<128x128xf32>
    %5 = tpu.matmul %3, %4, %cst_5 {dimension_numbers = #tpu.dot_dimension_numbers<[1], [0], [0], [1], [0, 0, 1, 1], [], []>} : vector<128x128xbf16>, vector<128x128xbf16>, vector<128x128xf32> -> vector<128x128xf32>
    %cst_6 = arith.constant 0.000000e+00 : f32
    %6 = vector.broadcast %cst_6 : f32 to vector<128x128xf32>
    %7 = arith.maximumf %5, %6 : vector<128x128xf32>
    %8 = arith.truncf %7 : vector<128x128xf32> to vector<128x128xbf16>
    %c0_7 = arith.constant 0 : index
    %c0_8 = arith.constant 0 : index
    %9 = vector.load %arg4[%c0_7, %c0_8] : memref<128x128xbf16, #tpu.memory_space<vmem>>, vector<128x128xbf16>
    tpu.vector_store %arg4[%c0_7, %c0_8], %8 {strides = array<i32>} : memref<128x128xbf16, #tpu.memory_space<vmem>>, vector<128x128xbf16>,
    return
  }
  func.func @transform_0(%arg0: i32) -> (i32, i32) {
    %c0_i32 = arith.constant 0 : i32
    %c0_i32_0 = arith.constant 0 : i32
    %c0_i32_1 = arith.constant 0 : i32
    return %c0_i32, %c0_i32_0 : i32, i32
  }
  func.func @transform_1(%arg0: i32) -> (i32, i32) {
    %c0_i32 = arith.constant 0 : i32
    %c0_i32_0 = arith.constant 0 : i32
    %c0_i32_1 = arith.constant 0 : i32
    return %c0_i32, %c0_i32_0 : i32, i32
  }
  func.func @transform_2(%arg0: i32) -> (i32, i32) {
    %c0_i32 = arith.constant 0 : i32
    %c0_i32_0 = arith.constant 0 : i32
    %c0_i32_1 = arith.constant 0 : i32
    return %c0_i32, %c0_i32_0 : i32, i32
  }
  func.func @transform_3(%arg0: i32) -> (i32, i32) {
    %c0_i32 = arith.constant 0 : i32
    %c0_i32_0 = arith.constant 0 : i32
    %c0_i32_1 = arith.constant 0 : i32
    return %c0_i32, %c0_i32_0 : i32, i32
  }
}

module attributes {stable_mosaic.version = 11 : i64} {
  func.func @_fused_layer_kernel(%arg0: i32, %arg1: memref<128x128xbf16, #tpu.memory_space<vmem>>, %arg2: memref<128x128xbf16, #tpu.memory_space<vmem>>, %arg3: memref<128x128xbf16, #tpu.memory_space<vmem>>, %arg4: memref<128x128xbf16, #tpu.memory_space<vmem>>) attributes {dimension_semantics = [#tpu.dimension_semantics<arbitrary>], iteration_bounds = array<i64: 1>, scalar_prefetch = 0 : i64, scratch_operands = 0 : i64, tpu.core_type = #tpu.core_type<tc>, window_params = [{pipeline_mode = #tpu.pipeline_mode<synchronous>, transform_indices = @transform_0, window_bounds = array<i64: 128, 128>}, {pipeline_mode = #tpu.pipeline_mode<synchronous>, transform_indices = @transform_1, window_bounds = array<i64: 128, 128>}, {pipeline_mode = #tpu.pipeline_mode<synchronous>, transform_indices = @transform_2, window_bounds = array<i64: 128, 128>}, {pipeline_mode = #tpu.pipeline_mode<synchronous>, transform_indices = @transform_3, window_bounds = array<i64: 128, 128>}]} {
    %c0 = arith.constant 0 : index
    %c0_0 = arith.constant 0 : index
    %0 = vector.load %arg2[%c0, %c0_0] : memref<128x128xbf16, #tpu.memory_space<vmem>>, vector<128x128xbf16>
    %c0_1 = arith.constant 0 : index
    %c0_2 = arith.constant 0 : index
    %1 = vector.load %arg3[%c0_1, %c0_2] : memref<128x128xbf16, #tpu.memory_space<vmem>>, vector<128x128xbf16>
    %cst = arith.constant dense<0.000000e+00> : vector<128x128xf32>
    %2 = tpu.matmul %0, %1, %cst {dimension_numbers = #tpu.dot_dimension_numbers<[1], [0], [0], [1], [0, 0, 1, 1], [], []>} : vector<128x128xbf16>, vector<128x128xbf16>, vector<128x128xf32> -> vector<128x128xf32>
    %c0_3 = arith.constant 0 : index
    %c0_4 = arith.constant 0 : index
    %3 = vector.load %arg1[%c0_3, %c0_4] : memref<128x128xbf16, #tpu.memory_space<vmem>>, vector<128x128xbf16>
    %4 = arith.truncf %2 : vector<128x128xf32> to vector<128x128xbf16>
    %cst_5 = arith.constant dense<0.000000e+00> : vector<128x128xf32>
    %5 = tpu.matmul %3, %4, %cst_5 {dimension_numbers = #tpu.dot_dimension_numbers<[1], [0], [0], [1], [0, 0, 1, 1], [], []>} : vector<128x128xbf16>, vector<128x128xbf16>, vector<128x128xf32> -> vector<128x128xf32>
    %cst_6 = arith.constant 0.000000e+00 : f32
    %6 = vector.broadcast %cst_6 : f32 to vector<128x128xf32>
    %7 = arith.maximumf %5, %6 : vector<128x128xf32>
    %8 = arith.truncf %7 : vector<128x128xf32> to vector<128x128xbf16>
    %c0_7 = arith.constant 0 : index
    %c0_8 = arith.constant 0 : index
    %9 = vector.load %arg4[%c0_7, %c0_8] : memref<128x128xbf16, #tpu.memory_space<vmem>>, vector<128x128xbf16>
    tpu.vector_store %arg4[%c0_7, %c0_8], %8 {strides = array<i32>} : memref<128x128xbf16, #tpu.memory_space<vmem>>, vector<128x128xbf16>,
    return
  }
  func.func @transform_0(%arg0: i32) -> (i32, i32) {
    %c0_i32 = arith.constant 0 : i32
    %c0_i32_0 = arith.constant 0 : i32
    %c0_i32_1 = arith.constant 0 : i32
    return %c0_i32, %c0_i32_0 : i32, i32
  }
  func.func @transform_1(%arg0: i32) -> (i32, i32) {
    %c0_i32 = arith.constant 0 : i32
    %c0_i32_0 = arith.constant 0 : i32
    %c0_i32_1 = arith.constant 0 : i32
    return %c0_i32, %c0_i32_0 : i32, i32
  }
  func.func @transform_2(%arg0: i32) -> (i32, i32) {
    %c0_i32 = arith.constant 0 : i32
    %c0_i32_0 = arith.constant 0 : i32
    %c0_i32_1 = arith.constant 0 : i32
    return %c0_i32, %c0_i32_0 : i32, i32
  }
  func.func @transform_3(%arg0: i32) -> (i32, i32) {
    %c0_i32 = arith.constant 0 : i32
    %c0_i32_0 = arith.constant 0 : i32
    %c0_i32_1 = arith.constant 0 : i32
    return %c0_i32, %c0_i32_0 : i32, i32
  }
}

</mosaic_0001>

<bundles_post_ra>
// kernel: _gcn_forward.2
= control target key start
LH: loop header
LB: loop body
LE: loop exit
PB: predicated region body
PF: predicated region fallthrough
CT: control target
= control target key end

     0   :  { %8 = vsyncpa [#allocation3], 0  ;;  %s951_s0 = inlined_call_operand.hbm [shape: bf16[128,128], index: 0, kind: input, shape index: {}]   ;;  %s952_s1 = inlined_call_operand.hbm [shape: bf16[128,128], index: 1, kind: input, shape index: {}]   ;;  %s953_s2 = inlined_call_operand.hbm [shape: bf16[128,128], index: 2, kind: input, shape index: {}]   ;;  %s954_s3 = inlined_call_operand.vmem [shape: bf16[128,128], index: 3, kind: output, shape index: {}]  }
   0x1   :  { %9 = vsyncpa [#allocation5], 0  ;;  %s850_s12 = smov [#allocation4]   ;;  %s851_s14 = smov [#allocation2]  }
   0x2   :  { %s27_s13 = sshll.u32 %s850_s12, 4  ;;  %s15_s15 = sshll.u32 %s851_s14, 4  ;;  %s28_s13 = int_to_ptr.vmem [resolvable:$true] %s27_s13  ;;  %s875_s15 = int_to_ptr.vmem [resolvable:$true] %s15_s15 }
   0x3   :  { %s780_s18 = scalar_lea.hbm %s952_s1, 1024 }
   0x4   :  { %p781_p0 = scmp.ne.s32.totalorder %s952_s1, %s780_s18  ;;  %p784_p1 = scmp.lt.u32.totalorder %s780_s18, %s952_s1 }
   0x6   :  { %p786_p2 = pnand %p784_p1, %p781_p0 }
   0x8   :  { %789 = shalt.err (!%p786_p2)
}
   0x9   :  { %s790_s23 = scalar_lea.vmem %s28_s13, 1024  ;;  %p795_p4 = scmp.lt.s32.totalorder %s28_s13, %s28_s13 }
   0xa   :  { %p791_p3 = scmp.ne.s32.totalorder %s28_s13, %s790_s23  ;;  %p796_p5 = scmp.lt.s32.totalorder %s790_s23, %s790_s23 }
   0xc   :  { %p797_p6 = por %p796_p5, %p795_p4 }
   0xe   :  { %p798_p7 = pnand %p797_p6, %p791_p3 }
  0x10   :  { %801 = shalt.err (!%p798_p7)
}
  0x11   :  { %s852_s24 = smov 64   ;;  %s853_s25 = smov 4  }
  0x12   :  { %33 = dma.hbm_to_vmem [thread:$0]  %s952_s1, 1024, %s28_s13, [#allocation5], %s852_s24, %s852_s24, %s853_s25  }
  0x13   :  { %s802_s30 = scalar_lea.hbm %s951_s0, 1024 }
  0x14   :  { %p803_p8 = scmp.ne.s32.totalorder %s951_s0, %s802_s30  ;;  %p806_p9 = scmp.lt.u32.totalorder %s802_s30, %s951_s0 }
  0x16   :  { %p808_p10 = pnand %p806_p9, %p803_p8 }
  0x18   :  { %811 = shalt.err (!%p808_p10)
}
  0x19   :  { %s812_s8 = scalar_lea.vmem %s875_s15, 1024  ;;  %p817_p12 = scmp.lt.s32.totalorder %s875_s15, %s875_s15 }
  0x1a   :  { %p813_p11 = scmp.ne.s32.totalorder %s875_s15, %s812_s8  ;;  %p818_p13 = scmp.lt.s32.totalorder %s812_s8, %s812_s8 }
  0x1c   :  { %p819_p0 = por %p818_p13, %p817_p12 }
  0x1e   :  { %p820_p1 = pnand %p819_p0, %p813_p11 }
  0x20   :  { %823 = shalt.err (!%p820_p1)
}
  0x21   :  { %21 = dma.hbm_to_vmem [thread:$0]  %s951_s0, 1024, %s875_s15, [#allocation3], %s852_s24, %s852_s24, %s853_s25  }
  0x22   :  { %s854_s10 = smov [#allocation6]   ;;  %s824_s14 = scalar_lea.hbm %s953_s2, 1024 }
  0x23   :  { %s39_s11 = sshll.u32 %s854_s10, 4  ;;  %p825_p2 = scmp.ne.s32.totalorder %s953_s2, %s824_s14  ;;  %s40_s11 = int_to_ptr.vmem [resolvable:$true] %s39_s11 }
  0x24   :  { %p828_p3 = scmp.lt.u32.totalorder %s824_s14, %s953_s2 }
  0x26   :  { %p830_p4 = pnand %p828_p3, %p825_p2 }
  0x28   :  { %833 = shalt.err (!%p830_p4)
}
  0x29   :  { %s834_s20 = scalar_lea.vmem %s40_s11, 1024  ;;  %p839_p6 = scmp.lt.s32.totalorder %s40_s11, %s40_s11 }
  0x2a   :  { %p835_p5 = scmp.ne.s32.totalorder %s40_s11, %s834_s20  ;;  %p840_p7 = scmp.lt.s32.totalorder %s834_s20, %s834_s20 }
  0x2c   :  { %p841_p8 = por %p840_p7, %p839_p6 }
  0x2e   :  { %p842_p9 = pnand %p841_p8, %p835_p5 }
  0x30   :  { %845 = shalt.err (!%p842_p9)
}
  0x31   :  { %45 = dma.hbm_to_vmem [thread:$0]  %s953_s2, 1024, %s40_s11, [#allocation5], %s852_s24, %s852_s24, %s853_s25  }
  0x32   :  { %846 = dma.done.wait [#allocation3], 1024  }
  0x33   :  { %847 = vsyncadd [#allocation3], 4294966272 }
  0x34   :  { %848 = dma.done.wait [#allocation5], 2048  }
  0x35   :  { %849 = vsyncadd [#allocation5], 4294965248  ;;  %v756_v0 = vld [vmem:[#allocation6] sm:$0xff]   ;;  %v757_v1 = vld [vmem:[#allocation6 + $0x8] sm:$0xff]  }
  0x36   :  { %687 = vmatprep.subr.bf16.mxu0 %v756_v0  ;;  %v758_v2 = vld [vmem:[#allocation6 + $0x10] sm:$0xff]   ;;  %v759_v3 = vld [vmem:[#allocation6 + $0x18] sm:$0xff]   ;;  %v764_v4 = vld [vmem:[#allocation4] sm:$0xff]  }
  0x37   :  { %688 = vmatpush3.bf16.msra.mxu0 %v756_v0  ;;  %703 = vmatprep.mubr.bf16.mxu0 %v764_v4  ;;  %v760_v5 = vld [vmem:[#allocation6 + $0x20] sm:$0xff]   ;;  %v761_v6 = vld [vmem:[#allocation6 + $0x28] sm:$0xff]   ;;  %v762_v7 = vld [vmem:[#allocation6 + $0x30] sm:$0xff]  }
  0x38   :  { %689 = vmatprep.subr.bf16.mxu0 %v757_v1  ;;  %v763_v8 = vld [vmem:[#allocation6 + $0x38] sm:$0xff]   ;;  %v765_v9 = vld [vmem:[#allocation4 + $0x8] sm:$0xff]   ;;  %v766_v10 = vld [vmem:[#allocation4 + $0x10] sm:$0xff]  }
  0x39   :  { %v767_v11 = vld [vmem:[#allocation4 + $0x18] sm:$0xff]   ;;  %v768_v12 = vld [vmem:[#allocation4 + $0x20] sm:$0xff]   ;;  %v769_v13 = vld [vmem:[#allocation4 + $0x28] sm:$0xff]  }
  0x3a   :  { %v770_v14 = vld [vmem:[#allocation4 + $0x30] sm:$0xff]   ;;  %v771_v15 = vld [vmem:[#allocation4 + $0x38] sm:$0xff]   ;;  %v772_v16 = vld [vmem:[#allocation2] sm:$0xff]  }
  0x3b   :  { %690 = vmatpush3.bf16.msra.mxu0 %v757_v1  ;;  %735 = vmatprep.mubr.bf16.mxu1 %v772_v16  ;;  %v773_v41 = vld [vmem:[#allocation2 + $0x8] sm:$0xff]   ;;  %v774_v42 = vld [vmem:[#allocation2 + $0x10] sm:$0xff]   ;;  %v775_v43 = vld [vmem:[#allocation2 + $0x18] sm:$0xff]  }
  0x3c   :  { %691 = vmatprep.subr.bf16.mxu0 %v758_v2  ;;  %v776_v44 = vld [vmem:[#allocation2 + $0x20] sm:$0xff]   ;;  %v777_v45 = vld [vmem:[#allocation2 + $0x28] sm:$0xff]   ;;  %v778_v46 = vld [vmem:[#allocation2 + $0x30] sm:$0xff]  }
  0x3d   :  { %v779_v47 = vld [vmem:[#allocation2 + $0x38] sm:$0xff]  }
  0x3f   :  { %692 = vmatpush3.bf16.msra.mxu0 %v758_v2 }
  0x40   :  { %693 = vmatprep.subr.bf16.mxu0 %v759_v3 }
  0x43   :  { %694 = vmatpush3.bf16.msra.mxu0 %v759_v3 }
  0x44   :  { %695 = vmatprep.subr.bf16.mxu0 %v760_v5 }
  0x47   :  { %696 = vmatpush3.bf16.msra.mxu0 %v760_v5 }
  0x48   :  { %697 = vmatprep.subr.bf16.mxu0 %v761_v6 }
  0x4b   :  { %698 = vmatpush3.bf16.msra.mxu0 %v761_v6 }
  0x4c   :  { %699 = vmatprep.subr.bf16.mxu0 %v762_v7 }
  0x4f   :  { %700 = vmatpush3.bf16.msra.mxu0 %v762_v7 }
  0x50   :  { %701 = vmatprep.subr.bf16.mxu0 %v763_v8 }
  0x53   :  { %702 = vmatpush3.bf16.msra.mxu0 %v763_v8 }
  0x56   :  { %704 = vmatmul.mubr.bf16.vlgmr.msra.gmra.mrb[0].mxu0 %v765_v9 }
  0x57   :  { %707 = vmatprep.mubr.bf16.mxu0 %v766_v10 }
  0x5e   :  { %708 = vmatmul.mubr.bf16.gmra.mrb[4].mxu0 %v767_v11 }
  0x5f   :  { %711 = vmatprep.mubr.bf16.mxu0 %v768_v12 }
  0x66   :  { %712 = vmatmul.mubr.bf16.gmra.mrb[8].mxu0 %v769_v13 }
  0x67   :  { %715 = vmatprep.mubr.bf16.mxu0 %v770_v14 }
  0x6e   :  { %716 = vmatmul.mubr.bf16.gmra.mrb[12].mxu0 %v771_v15 }
 0x129   :  { %v705_v17 = vpop.f32.mrb[0].mxu0 }
 0x12a   :  { %v218_v18 = vpop.f32.mrb[1].mxu0 }
 0x12b   :  { %v706_v19 = vpop.f32.mrb[2].mxu0 }
 0x12c   :  { %v298_v20 = vpack.c.bf16 %v706_v19, %v705_v17  ;;  %v221_v21 = vpop.f32.mrb[3].mxu0 }
 0x12d   :  { %v297_v22 = vpack.c.bf16 %v221_v21, %v218_v18 }
 0x12f   :  { %719 = vmatprep.subr.bf16.mxu1 %v297_v22 }
 0x130   :  { %720 = vmatpush3.bf16.msra.mxu1 %v297_v22 }
 0x131   :  { %v709_v23 = vpop.f32.mrb[4].mxu0  ;;  %721 = vmatprep.subr.bf16.mxu1 %v298_v20 }
 0x132   :  { %v234_v24 = vpop.f32.mrb[5].mxu0 }
 0x133   :  { %v710_v25 = vpop.f32.mrb[6].mxu0 }
 0x134   :  { %v300_v26 = vpack.c.bf16 %v710_v25, %v709_v23  ;;  %v237_v27 = vpop.f32.mrb[7].mxu0  ;;  %722 = vmatpush3.bf16.msra.mxu1 %v298_v20 }
 0x135   :  { %v299_v28 = vpack.c.bf16 %v237_v27, %v234_v24 }
 0x137   :  { %723 = vmatprep.subr.bf16.mxu1 %v299_v28 }
 0x138   :  { %724 = vmatpush3.bf16.msra.mxu1 %v299_v28 }
 0x139   :  { %v713_v29 = vpop.f32.mrb[8].mxu0  ;;  %725 = vmatprep.subr.bf16.mxu1 %v300_v26 }
 0x13a   :  { %v250_v30 = vpop.f32.mrb[9].mxu0 }
 0x13b   :  { %v714_v31 = vpop.f32.mrb[10].mxu0 }
 0x13c   :  { %v302_v32 = vpack.c.bf16 %v714_v31, %v713_v29  ;;  %v253_v33 = vpop.f32.mrb[11].mxu0  ;;  %726 = vmatpush3.bf16.msra.mxu1 %v300_v26 }
 0x13d   :  { %v301_v34 = vpack.c.bf16 %v253_v33, %v250_v30 }
 0x13f   :  { %727 = vmatprep.subr.bf16.mxu1 %v301_v34 }
 0x140   :  { %728 = vmatpush3.bf16.msra.mxu1 %v301_v34 }
 0x141   :  { %v717_v35 = vpop.f32.mrb[12].mxu0  ;;  %729 = vmatprep.subr.bf16.mxu1 %v302_v32 }
 0x142   :  { %v266_v36 = vpop.f32.mrb[13].mxu0 }
 0x143   :  { %v718_v37 = vpop.f32.mrb[14].mxu0 }
 0x144   :  { %v304_v38 = vpack.c.bf16 %v718_v37, %v717_v35  ;;  %v269_v39 = vpop.f32.mrb[15].mxu0  ;;  %730 = vmatpush3.bf16.msra.mxu1 %v302_v32 }
 0x145   :  { %v303_v40 = vpack.c.bf16 %v269_v39, %v266_v36 }
 0x147   :  { %731 = vmatprep.subr.bf16.mxu1 %v303_v40 }
 0x148   :  { %732 = vmatpush3.bf16.msra.mxu1 %v303_v40 }
 0x149   :  { %733 = vmatprep.subr.bf16.mxu1 %v304_v38 }
 0x14c   :  { %734 = vmatpush3.bf16.msra.mxu1 %v304_v38 }
 0x14f   :  { %736 = vmatmul.mubr.bf16.vlgmr.msra.gmra.mrb[0].mxu1 %v773_v41 }
 0x150   :  { %739 = vmatprep.mubr.bf16.mxu1 %v774_v42 }
 0x157   :  { %740 = vmatmul.mubr.bf16.gmra.mrb[4].mxu1 %v775_v43 }
 0x158   :  { %743 = vmatprep.mubr.bf16.mxu1 %v776_v44 }
 0x15f   :  { %744 = vmatmul.mubr.bf16.gmra.mrb[8].mxu1 %v777_v45 }
 0x160   :  { %747 = vmatprep.mubr.bf16.mxu1 %v778_v46 }
 0x167   :  { %748 = vmatmul.mubr.bf16.gmra.mrb[12].mxu1 %v779_v47 }
 0x222   :  { %v737_v48 = vpop.f32.mrb[0].mxu1 }
 0x223   :  { %v387_v49 = vpop.f32.mrb[1].mxu1  ;;  %v452_v51 = vmax.f32 %v737_v48, 0.0 }
 0x224   :  { %v738_v50 = vpop.f32.mrb[2].mxu1  ;;  %v450_v54 = vmax.f32 %v387_v49, 0.0 }
 0x225   :  { %v453_v52 = vmax.f32 %v738_v50, 0.0  ;;  %v390_v53 = vpop.f32.mrb[3].mxu1 }
 0x226   :  { %v451_v55 = vmax.f32 %v390_v53, 0.0 }
 0x227   :  { %v616_v56 = vpack.c.bf16 %v453_v52, %v452_v51 }
 0x228   :  { %v611_v57 = vpack.c.bf16 %v451_v55, %v450_v54 }
 0x229   :  { %648 = vst [vmem:[%s954_s3 + $0x8] sm:$0xff] %v616_v56  }
 0x22a   :  { %612 = vst [vmem:[%s954_s3] sm:$0xff] %v611_v57   ;;  %v741_v58 = vpop.f32.mrb[4].mxu1 }
 0x22b   :  { %v403_v59 = vpop.f32.mrb[5].mxu1  ;;  %v456_v61 = vmax.f32 %v741_v58, 0.0 }
 0x22c   :  { %v742_v60 = vpop.f32.mrb[6].mxu1  ;;  %v454_v0 = vmax.f32 %v403_v59, 0.0 }
 0x22d   :  { %v457_v62 = vmax.f32 %v742_v60, 0.0  ;;  %v406_v63 = vpop.f32.mrb[7].mxu1 }
 0x22e   :  { %v455_v1 = vmax.f32 %v406_v63, 0.0 }
 0x22f   :  { %v626_v2 = vpack.c.bf16 %v457_v62, %v456_v61 }
 0x230   :  { %v621_v3 = vpack.c.bf16 %v455_v1, %v454_v0 }
 0x231   :  { %650 = vst [vmem:[%s954_s3 + $0x18] sm:$0xff] %v626_v2  }
 0x232   :  { %649 = vst [vmem:[%s954_s3 + $0x10] sm:$0xff] %v621_v3   ;;  %v745_v4 = vpop.f32.mrb[8].mxu1 }
 0x233   :  { %v419_v5 = vpop.f32.mrb[9].mxu1  ;;  %v460_v7 = vmax.f32 %v745_v4, 0.0 }
 0x234   :  { %v746_v6 = vpop.f32.mrb[10].mxu1  ;;  %v458_v10 = vmax.f32 %v419_v5, 0.0 }
 0x235   :  { %v461_v8 = vmax.f32 %v746_v6, 0.0  ;;  %v422_v9 = vpop.f32.mrb[11].mxu1 }
 0x236   :  { %v459_v11 = vmax.f32 %v422_v9, 0.0 }
 0x237   :  { %v636_v12 = vpack.c.bf16 %v461_v8, %v460_v7 }
 0x238   :  { %v631_v13 = vpack.c.bf16 %v459_v11, %v458_v10 }
 0x239   :  { %652 = vst [vmem:[%s954_s3 + $0x28] sm:$0xff] %v636_v12  }
 0x23a   :  { %651 = vst [vmem:[%s954_s3 + $0x20] sm:$0xff] %v631_v13   ;;  %v749_v14 = vpop.f32.mrb[12].mxu1 }
 0x23b   :  { %v435_v15 = vpop.f32.mrb[13].mxu1  ;;  %v464_v17 = vmax.f32 %v749_v14, 0.0 }
 0x23c   :  { %v750_v16 = vpop.f32.mrb[14].mxu1  ;;  %v462_v20 = vmax.f32 %v435_v15, 0.0 }
 0x23d   :  { %v465_v18 = vmax.f32 %v750_v16, 0.0  ;;  %v438_v19 = vpop.f32.mrb[15].mxu1 }
 0x23e   :  { %v463_v21 = vmax.f32 %v438_v19, 0.0 }
 0x23f   :  { %v646_v22 = vpack.c.bf16 %v465_v18, %v464_v17 }
 0x240   :  { %v641_v23 = vpack.c.bf16 %v463_v21, %v462_v20 }
 0x241   :  { %654 = vst [vmem:[%s954_s3 + $0x38] sm:$0xff] %v646_v22  }
 0x242   :  { %653 = vst [vmem:[%s954_s3 + $0x30] sm:$0xff] %v641_v23  }
 0x243   :  { %550 = vsyncpa [#allocation3], 1 }
 0x244   :  { %551 = vsyncpa [#allocation5], 1 }

// kernel: _gcn_forward.3
= control target key start
LH: loop header
LB: loop body
LE: loop exit
PB: predicated region body
PF: predicated region fallthrough
CT: control target
= control target key end

     0   :  { %s879_s0 = inlined_call_operand.vmem [shape: bf16[128,128], index: 0, kind: input, shape index: {}]   ;;  %s880_s1 = inlined_call_operand.vmem [shape: bf16[128,128], index: 1, kind: input, shape index: {}]   ;;  %s881_s2 = inlined_call_operand.vmem [shape: bf16[128,128], index: 2, kind: input, shape index: {}]   ;;  %s882_s3 = inlined_call_operand.hbm [shape: bf16[128,128], index: 3, kind: output, shape index: {}]  }
   0x1   :  { %v724_v0 = vld [vmem:[%s881_s2] sm:$0xff]   ;;  %v725_v1 = vld [vmem:[%s881_s2 + $0x8] sm:$0xff]   ;;  %v726_v2 = vld [vmem:[%s881_s2 + $0x10] sm:$0xff]  }
   0x2   :  { %657 = vmatprep.subr.bf16.mxu0 %v724_v0  ;;  %v727_v3 = vld [vmem:[%s881_s2 + $0x18] sm:$0xff]   ;;  %v732_v4 = vld [vmem:[%s880_s1] sm:$0xff]   ;;  %v729_v6 = vld [vmem:[%s881_s2 + $0x28] sm:$0xff]  }
   0x3   :  { %658 = vmatpush3.bf16.msra.mxu0 %v724_v0  ;;  %673 = vmatprep.mubr.bf16.mxu0 %v732_v4  ;;  %v728_v5 = vld [vmem:[%s881_s2 + $0x20] sm:$0xff]   ;;  %v730_v7 = vld [vmem:[%s881_s2 + $0x30] sm:$0xff]  }
   0x4   :  { %659 = vmatprep.subr.bf16.mxu0 %v725_v1 }
   0x7   :  { %660 = vmatpush3.bf16.msra.mxu0 %v725_v1 }
   0x8   :  { %661 = vmatprep.subr.bf16.mxu0 %v726_v2 }
   0xb   :  { %662 = vmatpush3.bf16.msra.mxu0 %v726_v2 }
   0xc   :  { %663 = vmatprep.subr.bf16.mxu0 %v727_v3 }
   0xf   :  { %664 = vmatpush3.bf16.msra.mxu0 %v727_v3 }
  0x10   :  { %665 = vmatprep.subr.bf16.mxu0 %v728_v5 }
  0x13   :  { %666 = vmatpush3.bf16.msra.mxu0 %v728_v5 }
  0x14   :  { %667 = vmatprep.subr.bf16.mxu0 %v729_v6 }
  0x15   :  { %8 = vsyncpa [#allocation3], 0  ;;  %v731_v8 = vld [vmem:[%s881_s2 + $0x38] sm:$0xff]   ;;  %v733_v9 = vld [vmem:[%s880_s1 + $0x8] sm:$0xff]  }
  0x16   :  { %v734_v10 = vld [vmem:[%s880_s1 + $0x10] sm:$0xff]   ;;  %v735_v11 = vld [vmem:[%s880_s1 + $0x18] sm:$0xff]   ;;  %v736_v12 = vld [vmem:[%s880_s1 + $0x20] sm:$0xff]  }
  0x17   :  { %668 = vmatpush3.bf16.msra.mxu0 %v729_v6  ;;  %v737_v13 = vld [vmem:[%s880_s1 + $0x28] sm:$0xff]   ;;  %v738_v14 = vld [vmem:[%s880_s1 + $0x30] sm:$0xff]   ;;  %v739_v15 = vld [vmem:[%s880_s1 + $0x38] sm:$0xff]  }
  0x18   :  { %669 = vmatprep.subr.bf16.mxu0 %v730_v7  ;;  %v740_v16 = vld [vmem:[%s879_s0] sm:$0xff]   ;;  %v741_v41 = vld [vmem:[%s879_s0 + $0x8] sm:$0xff]   ;;  %v742_v42 = vld [vmem:[%s879_s0 + $0x10] sm:$0xff]  }
  0x19   :  { %705 = vmatprep.mubr.bf16.mxu1 %v740_v16  ;;  %v743_v43 = vld [vmem:[%s879_s0 + $0x18] sm:$0xff]   ;;  %v744_v44 = vld [vmem:[%s879_s0 + $0x20] sm:$0xff]   ;;  %v745_v45 = vld [vmem:[%s879_s0 + $0x28] sm:$0xff]  }
  0x1a   :  { %v746_v46 = vld [vmem:[%s879_s0 + $0x30] sm:$0xff]   ;;  %v747_v47 = vld [vmem:[%s879_s0 + $0x38] sm:$0xff]   ;;  %s772_s0 = smov [#allocation2]  }
  0x1b   :  { %670 = vmatpush3.bf16.msra.mxu0 %v730_v7  ;;  %s511_s4 = sshll.u32 %s772_s0, 4  ;;  %s512_s4 = int_to_ptr.vmem [resolvable:$true] %s511_s4 }
  0x1c   :  { %671 = vmatprep.subr.bf16.mxu0 %v731_v8  ;;  %s748_s5 = scalar_lea.vmem %s512_s4, 1024  ;;  %p753_p1 = scmp.lt.s32.totalorder %s512_s4, %s512_s4 }
  0x1d   :  { %p749_p0 = scmp.ne.s32.totalorder %s512_s4, %s748_s5  ;;  %p754_p2 = scmp.lt.s32.totalorder %s748_s5, %s748_s5 }
  0x1f   :  { %672 = vmatpush3.bf16.msra.mxu0 %v731_v8  ;;  %p755_p3 = por %p754_p2, %p753_p1 }
  0x21   :  { %p756_p4 = pnand %p755_p3, %p749_p0 }
  0x22   :  { %674 = vmatmul.mubr.bf16.vlgmr.msra.gmra.mrb[0].mxu0 %v733_v9 }
  0x23   :  { %677 = vmatprep.mubr.bf16.mxu0 %v734_v10 }
  0x2a   :  { %678 = vmatmul.mubr.bf16.gmra.mrb[4].mxu0 %v735_v11 }
  0x2b   :  { %681 = vmatprep.mubr.bf16.mxu0 %v736_v12 }
  0x32   :  { %682 = vmatmul.mubr.bf16.gmra.mrb[8].mxu0 %v737_v13 }
  0x33   :  { %685 = vmatprep.mubr.bf16.mxu0 %v738_v14 }
  0x3a   :  { %686 = vmatmul.mubr.bf16.gmra.mrb[12].mxu0 %v739_v15 }
  0xf5   :  { %v675_v17 = vpop.f32.mrb[0].mxu0 }
  0xf6   :  { %v178_v18 = vpop.f32.mrb[1].mxu0 }
  0xf7   :  { %v676_v19 = vpop.f32.mrb[2].mxu0 }
  0xf8   :  { %v258_v20 = vpack.c.bf16 %v676_v19, %v675_v17  ;;  %v181_v21 = vpop.f32.mrb[3].mxu0 }
  0xf9   :  { %v257_v22 = vpack.c.bf16 %v181_v21, %v178_v18 }
  0xfb   :  { %689 = vmatprep.subr.bf16.mxu1 %v257_v22 }
  0xfc   :  { %690 = vmatpush3.bf16.msra.mxu1 %v257_v22 }
  0xfd   :  { %v679_v23 = vpop.f32.mrb[4].mxu0  ;;  %691 = vmatprep.subr.bf16.mxu1 %v258_v20 }
  0xfe   :  { %v194_v24 = vpop.f32.mrb[5].mxu0 }
  0xff   :  { %v680_v25 = vpop.f32.mrb[6].mxu0 }
 0x100   :  { %v260_v26 = vpack.c.bf16 %v680_v25, %v679_v23  ;;  %v197_v27 = vpop.f32.mrb[7].mxu0  ;;  %692 = vmatpush3.bf16.msra.mxu1 %v258_v20 }
 0x101   :  { %v259_v28 = vpack.c.bf16 %v197_v27, %v194_v24 }
 0x103   :  { %693 = vmatprep.subr.bf16.mxu1 %v259_v28 }
 0x104   :  { %694 = vmatpush3.bf16.msra.mxu1 %v259_v28 }
 0x105   :  { %v683_v29 = vpop.f32.mrb[8].mxu0  ;;  %695 = vmatprep.subr.bf16.mxu1 %v260_v26 }
 0x106   :  { %v210_v30 = vpop.f32.mrb[9].mxu0 }
 0x107   :  { %v684_v31 = vpop.f32.mrb[10].mxu0 }
 0x108   :  { %v262_v32 = vpack.c.bf16 %v684_v31, %v683_v29  ;;  %v213_v33 = vpop.f32.mrb[11].mxu0  ;;  %696 = vmatpush3.bf16.msra.mxu1 %v260_v26 }
 0x109   :  { %v261_v34 = vpack.c.bf16 %v213_v33, %v210_v30 }
 0x10b   :  { %697 = vmatprep.subr.bf16.mxu1 %v261_v34 }
 0x10c   :  { %698 = vmatpush3.bf16.msra.mxu1 %v261_v34 }
 0x10d   :  { %v687_v35 = vpop.f32.mrb[12].mxu0  ;;  %699 = vmatprep.subr.bf16.mxu1 %v262_v32 }
 0x10e   :  { %v226_v36 = vpop.f32.mrb[13].mxu0 }
 0x10f   :  { %v688_v37 = vpop.f32.mrb[14].mxu0 }
 0x110   :  { %v264_v38 = vpack.c.bf16 %v688_v37, %v687_v35  ;;  %v229_v39 = vpop.f32.mrb[15].mxu0  ;;  %700 = vmatpush3.bf16.msra.mxu1 %v262_v32 }
 0x111   :  { %v263_v40 = vpack.c.bf16 %v229_v39, %v226_v36 }
 0x113   :  { %701 = vmatprep.subr.bf16.mxu1 %v263_v40 }
 0x114   :  { %702 = vmatpush3.bf16.msra.mxu1 %v263_v40 }
 0x115   :  { %703 = vmatprep.subr.bf16.mxu1 %v264_v38 }
 0x118   :  { %704 = vmatpush3.bf16.msra.mxu1 %v264_v38 }
 0x11b   :  { %706 = vmatmul.mubr.bf16.vlgmr.msra.gmra.mrb[0].mxu1 %v741_v41 }
 0x11c   :  { %709 = vmatprep.mubr.bf16.mxu1 %v742_v42 }
 0x123   :  { %710 = vmatmul.mubr.bf16.gmra.mrb[4].mxu1 %v743_v43 }
 0x124   :  { %713 = vmatprep.mubr.bf16.mxu1 %v744_v44 }
 0x12b   :  { %714 = vmatmul.mubr.bf16.gmra.mrb[8].mxu1 %v745_v45 }
 0x12c   :  { %717 = vmatprep.mubr.bf16.mxu1 %v746_v46 }
 0x133   :  { %718 = vmatmul.mubr.bf16.gmra.mrb[12].mxu1 %v747_v47 }
 0x1ee   :  { %v707_v48 = vpop.f32.mrb[0].mxu1 }
 0x1ef   :  { %v347_v49 = vpop.f32.mrb[1].mxu1  ;;  %v412_v51 = vmax.f32 %v707_v48, 0.0 }
 0x1f0   :  { %v708_v50 = vpop.f32.mrb[2].mxu1  ;;  %v410_v54 = vmax.f32 %v347_v49, 0.0 }
 0x1f1   :  { %v413_v52 = vmax.f32 %v708_v50, 0.0  ;;  %v350_v53 = vpop.f32.mrb[3].mxu1 }
 0x1f2   :  { %v411_v55 = vmax.f32 %v350_v53, 0.0 }
 0x1f3   :  { %v586_v56 = vpack.c.bf16 %v413_v52, %v412_v51 }
 0x1f4   :  { %v581_v57 = vpack.c.bf16 %v411_v55, %v410_v54 }
 0x1f5   :  { %618 = vst [vmem:[#allocation2 + $0x8] sm:$0xff] %v586_v56  }
 0x1f6   :  { %582 = vst [vmem:[#allocation2] sm:$0xff] %v581_v57   ;;  %v711_v58 = vpop.f32.mrb[4].mxu1 }
 0x1f7   :  { %v363_v59 = vpop.f32.mrb[5].mxu1  ;;  %v416_v61 = vmax.f32 %v711_v58, 0.0 }
 0x1f8   :  { %v712_v60 = vpop.f32.mrb[6].mxu1  ;;  %v414_v0 = vmax.f32 %v363_v59, 0.0 }
 0x1f9   :  { %v417_v62 = vmax.f32 %v712_v60, 0.0  ;;  %v366_v63 = vpop.f32.mrb[7].mxu1 }
 0x1fa   :  { %v415_v1 = vmax.f32 %v366_v63, 0.0 }
 0x1fb   :  { %v596_v2 = vpack.c.bf16 %v417_v62, %v416_v61 }
 0x1fc   :  { %v591_v3 = vpack.c.bf16 %v415_v1, %v414_v0 }
 0x1fd   :  { %620 = vst [vmem:[#allocation2 + $0x18] sm:$0xff] %v596_v2  }
 0x1fe   :  { %619 = vst [vmem:[#allocation2 + $0x10] sm:$0xff] %v591_v3   ;;  %v715_v4 = vpop.f32.mrb[8].mxu1 }
 0x1ff   :  { %v379_v5 = vpop.f32.mrb[9].mxu1  ;;  %v420_v7 = vmax.f32 %v715_v4, 0.0 }
 0x200   :  { %v716_v6 = vpop.f32.mrb[10].mxu1  ;;  %v418_v10 = vmax.f32 %v379_v5, 0.0 }
 0x201   :  { %v421_v8 = vmax.f32 %v716_v6, 0.0  ;;  %v382_v9 = vpop.f32.mrb[11].mxu1 }
 0x202   :  { %v419_v11 = vmax.f32 %v382_v9, 0.0 }
 0x203   :  { %v606_v12 = vpack.c.bf16 %v421_v8, %v420_v7 }
 0x204   :  { %v601_v13 = vpack.c.bf16 %v419_v11, %v418_v10 }
 0x205   :  { %622 = vst [vmem:[#allocation2 + $0x28] sm:$0xff] %v606_v12  }
 0x206   :  { %621 = vst [vmem:[#allocation2 + $0x20] sm:$0xff] %v601_v13   ;;  %v719_v14 = vpop.f32.mrb[12].mxu1 }
 0x207   :  { %v395_v15 = vpop.f32.mrb[13].mxu1  ;;  %v424_v17 = vmax.f32 %v719_v14, 0.0 }
 0x208   :  { %v720_v16 = vpop.f32.mrb[14].mxu1  ;;  %v422_v20 = vmax.f32 %v395_v15, 0.0 }
 0x209   :  { %v425_v18 = vmax.f32 %v720_v16, 0.0  ;;  %v398_v19 = vpop.f32.mrb[15].mxu1 }
 0x20a   :  { %v423_v21 = vmax.f32 %v398_v19, 0.0 }
 0x20b   :  { %v616_v22 = vpack.c.bf16 %v425_v18, %v424_v17 }
 0x20c   :  { %v611_v23 = vpack.c.bf16 %v423_v21, %v422_v20 }
 0x20d   :  { %624 = vst [vmem:[#allocation2 + $0x38] sm:$0xff] %v616_v22  }
 0x20e   :  { %623 = vst [vmem:[#allocation2 + $0x30] sm:$0xff] %v611_v23  }
 0x20f   :  { %759 = shalt.err (!%p756_p4)
}
 0x210   :  { %s760_s8 = scalar_lea.hbm %s882_s3, 1024 }
 0x211   :  { %p761_p5 = scmp.ne.s32.totalorder %s882_s3, %s760_s8  ;;  %p764_p6 = scmp.lt.u32.totalorder %s760_s8, %s882_s3 }
 0x213   :  { %p766_p7 = pnand %p764_p6, %p761_p5 }
 0x215   :  { %769 = shalt.err (!%p766_p7)
}
 0x216   :  { %s773_s12 = smov 64   ;;  %s774_s13 = smov 4  }
 0x217   :  { %517 = dma.vmem_to_hbm [thread:$0]  %s512_s4, 1024, %s882_s3, [#allocation3], %s773_s12, %s773_s12, %s774_s13  }
 0x218   :  { %770 = dma.done.wait [#allocation3], 1024  }
 0x219   :  { %771 = vsyncadd [#allocation3], 4294966272 }
 0x21a   :  { %521 = vsyncpa [#allocation3], 1 }

</bundles_post_ra>
